<compile_context>
chip_gen: v6e
topology: v6e:2x2x1
jax: 0.10.0
libtpu: 0.0.40
codegen_flags: <defaults>
</compile_context>

<pallas_src>
import jax
import jax.numpy as jnp
from jax import lax
from jax.experimental import pallas as pl
from jax.experimental.pallas import tpu as pltpu


def _round_up(x, m):
    return (x + m - 1) // m * m


def helper_net_kernel(x_ref, w1_ref, b1_ref, w2_ref, b2_ref, o_ref):
    # embed: [TM, Kp] @ [Kp, Ep] -> [TM, Ep]  (MXU, f32 accumulate)
    e = jnp.dot(x_ref[...], w1_ref[...], preferred_element_type=jnp.float32)
    e = e + b1_ref[...]                       # b1 is [1, Ep], broadcasts over rows

    # L2 normalize over the feature dim. Padded embed columns are exactly zero
    # (zero w1 cols + zero b1 pad) so the sum of squares is unchanged by padding.
    # rsqrt lowers to the EUP slot; the multiply stays on the VPU (no long divide).
    inv = lax.rsqrt(jnp.sum(e * e, axis=1, keepdims=True))
    e = e * inv

    # ReLU
    e = jnp.maximum(e, 0.0)

    # classify: [TM, Ep] @ [Ep, Np] -> [TM, Np]; padded w2 rows are zero.
    out = jnp.dot(e, w2_ref[...], preferred_element_type=jnp.float32)
    out = out + b2_ref[...]                   # b2 is [1, Np]
    o_ref[...] = out.astype(o_ref.dtype)


def helper_net_forward(x, w1, b1, w2, b2, *, tm_max=256):
    B, K = x.shape
    E = w1.shape[1]
    N = w2.shape[1]

    # Lane alignment: pad K / E / N to multiples of 128 with zeros.
    Kp = _round_up(K, 128)
    Ep = _round_up(E, 128)
    Np = _round_up(N, 128)

    # Batch tile: multiple of 8 sublanes; grid over batch for pipelining / megacore.
    Bp8 = _round_up(max(B, 1), 8)
    tm = min(tm_max, Bp8)
    Bp = _round_up(Bp8, tm)
    nb = Bp // tm

    f32 = jnp.float32
    xp  = jnp.zeros((Bp, Kp), f32).at[:B, :K].set(x.astype(f32))
    w1p = jnp.zeros((Kp, Ep), f32).at[:K, :E].set(w1.astype(f32))
    b1p = jnp.zeros((1, Ep), f32).at[:, :E].set(b1.astype(f32).reshape(1, E))
    w2p = jnp.zeros((Ep, Np), f32).at[:E, :N].set(w2.astype(f32))
    b2p = jnp.zeros((1, Np), f32).at[:, :N].set(b2.astype(f32).reshape(1, N))

    cost = pl.CostEstimate(
        flops=2 * Bp * (Kp * Ep + Ep * Np),
        transcendentals=Bp,  # one rsqrt per row
        bytes_accessed=4 * (Bp * Kp + Kp * Ep + Ep + Ep * Np + Np + Bp * Np),
    )

    out_p = pl.pallas_call(
        helper_net_kernel,
        out_shape=jax.ShapeDtypeStruct((Bp, Np), x.dtype),
        grid=(nb,),
        in_specs=[
            pl.BlockSpec((tm, Kp), lambda i: (i, 0)),   # x: blocked on batch
            pl.BlockSpec((Kp, Ep), lambda i: (0, 0)),   # w1: resident
            pl.BlockSpec((1, Ep),  lambda i: (0, 0)),   # b1: resident
            pl.BlockSpec((Ep, Np), lambda i: (0, 0)),   # w2: resident
            pl.BlockSpec((1, Np),  lambda i: (0, 0)),   # b2: resident
        ],
        out_specs=pl.BlockSpec((tm, Np), lambda i: (i, 0)),
        compiler_params=pltpu.CompilerParams(
            dimension_semantics=("parallel",),          # v7x: shard batch over both TCs
            vmem_limit_bytes=32 << 20,                  # within v7x's 64 MiB physical
        ),
        cost_estimate=cost,
    )(xp, w1p, b1p, w2p, b2p)

    # Drop batch / class padding (padded lanes are exact zeros from zero w2/b2 cols).
    return out_p[:B, :N]


def reference_forward(x, w1, b1, w2, b2):
    e = x @ w1 + b1
    e = e / jnp.sqrt(jnp.sum(e * e, axis=1, keepdims=True))
    e = jnp.maximum(e, 0.0)
    return e @ w2 + b2


if __name__ == "__main__":
    # Small, forward-consistent shapes.
    B, in_features, embed_size, num_class = 8, 32, 32, 16

    key = jax.random.PRNGKey(0)
    kx, kw1, kb1, kw2, kb2 = jax.random.split(key, 5)

    x = jax.random.normal(kx, (B, in_features), dtype=jnp.float32)

    # Deterministic parameter init (PyTorch Linear uses uniform(-1/sqrt(in), 1/sqrt(in))).
    lim1 = 1.0 / jnp.sqrt(float(in_features))
    lim2 = 1.0 / jnp.sqrt(float(embed_size))
    # Stored pre-transposed: [in, out].
    w1 = jax.random.uniform(kw1, (in_features, embed_size), jnp.float32, -lim1, lim1)
    b1 = jax.random.uniform(kb1, (1, embed_size), jnp.float32, -lim1, lim1)
    w2 = jax.random.uniform(kw2, (embed_size, num_class), jnp.float32, -lim2, lim2)
    b2 = jax.random.uniform(kb2, (1, num_class), jnp.float32, -lim2, lim2)

    out = helper_net_forward(x, w1, b1, w2, b2)
    out = jax.block_until_ready(out)

    ref = reference_forward(x, w1, b1, w2, b2)
    assert out.shape == (B, num_class)
    assert jnp.allclose(out, ref, atol=1e-5, rtol=1e-4), float(jnp.max(jnp.abs(out - ref)))

    print("KERNEL_OK")
</pallas_src>

<mosaic_0001>
module attributes {stable_mosaic.version = 11 : i64} {
  func.func @helper_net_kernel(%arg0: i32, %arg1: memref<8x128xf32, #tpu.memory_space<vmem>>, %arg2: memref<128x128xf32, #tpu.memory_space<vmem>>, %arg3: memref<1x128xf32, #tpu.memory_space<vmem>>, %arg4: memref<128x128xf32, #tpu.memory_space<vmem>>, %arg5: memref<1x128xf32, #tpu.memory_space<vmem>>, %arg6: memref<8x128xf32, #tpu.memory_space<vmem>>) attributes {dimension_semantics = [#tpu.dimension_semantics<parallel>], iteration_bounds = array<i64: 1>, scalar_prefetch = 0 : i64, scratch_operands = 0 : i64, tpu.core_type = #tpu.core_type<tc>, window_params = [{transform_indices = @transform_0, window_bounds = array<i64: 8, 128>}, {pipeline_mode = #tpu.pipeline_mode<synchronous>, transform_indices = @transform_1, window_bounds = array<i64: 128, 128>}, {pipeline_mode = #tpu.pipeline_mode<synchronous>, transform_indices = @transform_2, window_bounds = array<i64: 1, 128>}, {pipeline_mode = #tpu.pipeline_mode<synchronous>, transform_indices = @transform_3, window_bounds = array<i64: 128, 128>}, {pipeline_mode = #tpu.pipeline_mode<synchronous>, transform_indices = @transform_4, window_bounds = array<i64: 1, 128>}, {transform_indices = @transform_5, window_bounds = array<i64: 8, 128>}]} {
    %c0 = arith.constant 0 : index
    %c0_0 = arith.constant 0 : index
    %0 = vector.load %arg1[%c0, %c0_0] : memref<8x128xf32, #tpu.memory_space<vmem>>, vector<8x128xf32>
    %c0_1 = arith.constant 0 : index
    %c0_2 = arith.constant 0 : index
    %1 = vector.load %arg2[%c0_1, %c0_2] : memref<128x128xf32, #tpu.memory_space<vmem>>, vector<128x128xf32>
    %cst = arith.constant dense<0.000000e+00> : vector<8x128xf32>
    %2 = tpu.matmul %0, %1, %cst {dimension_numbers = #tpu.dot_dimension_numbers<[1], [0], [0], [1], [0, 0, 1, 1], [], []>} : vector<8x128xf32>, vector<128x128xf32>, vector<8x128xf32> -> vector<8x128xf32>
    %c0_3 = arith.constant 0 : index
    %c0_4 = arith.constant 0 : index
    %3 = vector.load %arg3[%c0_3, %c0_4] : memref<1x128xf32, #tpu.memory_space<vmem>>, vector<1x128xf32>
    %4 = vector.broadcast %3 : vector<1x128xf32> to vector<8x128xf32>
    %5 = arith.addf %2, %4 : vector<8x128xf32>
    %6 = arith.mulf %5, %5 : vector<8x128xf32>
    %cst_5 = arith.constant dense<0.000000e+00> : vector<8xf32>
    %7 = vector.multi_reduction <add>, %6, %cst_5 [1] : vector<8x128xf32> to vector<8xf32>
    %8 = vector.shape_cast %7 : vector<8xf32> to vector<8x1xf32>
    %9 = math.rsqrt %8 : vector<8x1xf32>
    %10 = vector.broadcast %9 : vector<8x1xf32> to vector<8x128xf32>
    %11 = arith.mulf %5, %10 : vector<8x128xf32>
    %cst_6 = arith.constant 0.000000e+00 : f32
    %12 = vector.broadcast %cst_6 : f32 to vector<8x128xf32>
    %13 = arith.maximumf %11, %12 : vector<8x128xf32>
    %c0_7 = arith.constant 0 : index
    %c0_8 = arith.constant 0 : index
    %14 = vector.load %arg4[%c0_7, %c0_8] : memref<128x128xf32, #tpu.memory_space<vmem>>, vector<128x128xf32>
    %cst_9 = arith.constant dense<0.000000e+00> : vector<8x128xf32>
    %15 = tpu.matmul %13, %14, %cst_9 {dimension_numbers = #tpu.dot_dimension_numbers<[1], [0], [0], [1], [0, 0, 1, 1], [], []>} : vector<8x128xf32>, vector<128x128xf32>, vector<8x128xf32> -> vector<8x128xf32>
    %c0_10 = arith.constant 0 : index
    %c0_11 = arith.constant 0 : index
    %16 = vector.load %arg5[%c0_10, %c0_11] : memref<1x128xf32, #tpu.memory_space<vmem>>, vector<1x128xf32>
    %17 = vector.broadcast %16 : vector<1x128xf32> to vector<8x128xf32>
    %18 = arith.addf %15, %17 : vector<8x128xf32>
    %c0_12 = arith.constant 0 : index
    %c0_13 = arith.constant 0 : index
    %19 = vector.load %arg6[%c0_12, %c0_13] : memref<8x128xf32, #tpu.memory_space<vmem>>, vector<8x128xf32>
    tpu.vector_store %arg6[%c0_12, %c0_13], %18 {strides = array<i32>} : memref<8x128xf32, #tpu.memory_space<vmem>>, vector<8x128xf32>,
    return
  }
  func.func @transform_0(%arg0: i32) -> (i32, i32) {
    %c0_i32 = arith.constant 0 : i32
    %c0_i32_0 = arith.constant 0 : i32
    return %arg0, %c0_i32 : i32, i32
  }
  func.func @transform_1(%arg0: i32) -> (i32, i32) {
    %c0_i32 = arith.constant 0 : i32
    %c0_i32_0 = arith.constant 0 : i32
    %c0_i32_1 = arith.constant 0 : i32
    return %c0_i32, %c0_i32_0 : i32, i32
  }
  func.func @transform_2(%arg0: i32) -> (i32, i32) {
    %c0_i32 = arith.constant 0 : i32
    %c0_i32_0 = arith.constant 0 : i32
    %c0_i32_1 = arith.constant 0 : i32
    return %c0_i32, %c0_i32_0 : i32, i32
  }
  func.func @transform_3(%arg0: i32) -> (i32, i32) {
    %c0_i32 = arith.constant 0 : i32
    %c0_i32_0 = arith.constant 0 : i32
    %c0_i32_1 = arith.constant 0 : i32
    return %c0_i32, %c0_i32_0 : i32, i32
  }
  func.func @transform_4(%arg0: i32) -> (i32, i32) {
    %c0_i32 = arith.constant 0 : i32
    %c0_i32_0 = arith.constant 0 : i32
    %c0_i32_1 = arith.constant 0 : i32
    return %c0_i32, %c0_i32_0 : i32, i32
  }
  func.func @transform_5(%arg0: i32) -> (i32, i32) {
    %c0_i32 = arith.constant 0 : i32
    %c0_i32_0 = arith.constant 0 : i32
    return %arg0, %c0_i32 : i32, i32
  }
}

</mosaic_0001>

<bundles_post_ra>
// kernel: tpu_custom_call.1
= control target key start
LH: loop header
LB: loop body
LE: loop exit
PB: predicated region body
PF: predicated region fallthrough
CT: control target
= control target key end

     0   :  { %10 = vsyncpa [#allocation3], 0  ;;  %s562_s0 = inlined_call_operand.hbm [shape: f32[8,128], index: 0, kind: input, shape index: {}]   ;;  %s563_s1 = inlined_call_operand.hbm [shape: f32[128,128], index: 1, kind: input, shape index: {}]   ;;  %s564_s2 = inlined_call_operand.vmem [shape: f32[1,128], index: 2, kind: input, shape index: {}]   ;;  %s565_s3 = inlined_call_operand.hbm [shape: f32[128,128], index: 3, kind: input, shape index: {}]   ;;  %s566_s4 = inlined_call_operand.vmem [shape: f32[1,128], index: 4, kind: input, shape index: {}]   ;;  %s567_s5 = inlined_call_operand.hbm [shape: f32[8,128], index: 5, kind: output, shape index: {}]  }
   0x1   :  { %11 = vsyncpa [#allocation6], 0 }
   0x2   :  { %12 = vsyncpa [#allocation4], 0  ;;  %s472_s18 = smov [#allocation5]  }
   0x3   :  { %s28_s19 = sshll.u32 %s472_s18, 4  ;;  %s29_s19 = int_to_ptr.vmem [resolvable:$true] %s28_s19 }
   0x4   :  { %s394_s20 = scalar_lea.vmem %s29_s19, 2048  ;;  %p399_p1 = scmp.lt.s32.totalorder %s29_s19, %s29_s19 }
   0x5   :  { %p395_p0 = scmp.ne.s32.totalorder %s29_s19, %s394_s20  ;;  %p400_p2 = scmp.lt.s32.totalorder %s394_s20, %s394_s20 }
   0x7   :  { %p401_p3 = por %p400_p2, %p399_p1 }
   0x9   :  { %p402_p4 = pnand %p401_p3, %p395_p0 }
   0xb   :  { %405 = shalt.err (!%p402_p4)
}
   0xc   :  { %s473_s21 = smov 128   ;;  %s474_s22 = smov 8  }
   0xd   :  { %34 = dma.hbm_to_vmem [thread:$0]  %s563_s1, 2048, %s29_s19, [#allocation6], %s473_s21, %s473_s21, %s474_s22  }
   0xe   :  { %s475_s25 = smov [#allocation2]   ;;  %s476_s27 = smov [#allocation7]  }
   0xf   :  { %s19_s26 = sshll.u32 %s475_s25, 4  ;;  %s42_s28 = sshll.u32 %s476_s27, 4  ;;  %s20_s26 = int_to_ptr.vmem [resolvable:$true] %s19_s26  ;;  %s43_s28 = int_to_ptr.vmem [resolvable:$true] %s42_s28 }
  0x10   :  { %s414_s29 = scalar_lea.vmem %s20_s26, 128  ;;  %p419_p6 = scmp.lt.s32.totalorder %s20_s26, %s20_s26 }
  0x11   :  { %p415_p5 = scmp.ne.s32.totalorder %s20_s26, %s414_s29  ;;  %p420_p7 = scmp.lt.s32.totalorder %s414_s29, %s414_s29 }
  0x13   :  { %p421_p8 = por %p420_p7, %p419_p6 }
  0x15   :  { %p422_p9 = pnand %p421_p8, %p415_p5 }
  0x17   :  { %425 = shalt.err (!%p422_p9)
}
  0x18   :  { %22 = dma.hbm_to_vmem [thread:$0]  %s562_s0, 128, %s20_s26, [#allocation3]  }
  0x19   :  { %s434_s7 = scalar_lea.vmem %s43_s28, 2048  ;;  %p439_p11 = scmp.lt.s32.totalorder %s43_s28, %s43_s28 }
  0x1a   :  { %p435_p10 = scmp.ne.s32.totalorder %s43_s28, %s434_s7  ;;  %p440_p12 = scmp.lt.s32.totalorder %s434_s7, %s434_s7 }
  0x1c   :  { %p441_p13 = por %p440_p12, %p439_p11 }
  0x1e   :  { %p442_p0 = pnand %p441_p13, %p435_p10 }
  0x20   :  { %445 = shalt.err (!%p442_p0)
}
  0x21   :  { %48 = dma.hbm_to_vmem [thread:$0]  %s565_s3, 2048, %s43_s28, [#allocation6], %s473_s21, %s473_s21, %s474_s22  }
  0x22   :  { %466 = dma.done.wait [#allocation3], 128  }
  0x23   :  { %467 = vsyncadd [#allocation3], 4294967168 }
  0x24   :  { %468 = dma.done.wait [#allocation6], 4096  }
  0x25   :  { %469 = vsyncadd [#allocation6], 4294963200  ;;  %v477_v0 = vmov 0.0   ;;  %vm478_vm0 = vmmov 0   ;;  %v76_v1 = vld [vmem:[#allocation5 + $0x78] sm:$0xff]  ;;  %v75_v2 = vld [vmem:[#allocation5 + $0x70] sm:$0xff] }
  0x26   :  { %306 = vmatprep.subr.mxu0 %v477_v0  ;;  %338 = vmatprep.mubr.msk.f32.mxu0 %vm478_vm0, %v477_v0  ;;  %v74_v3 = vld [vmem:[#allocation5 + $0x68] sm:$0xff]  ;;  %v73_v4 = vld [vmem:[#allocation5 + $0x60] sm:$0xff]  ;;  %v72_v5 = vld [vmem:[#allocation5 + $0x58] sm:$0xff]  ;;  %s479_s10 = smov [#allocation8]  }
  0x27   :  { %341 = vmatprep.subr.mxu1 %v477_v0  ;;  %373 = vmatprep.mubr.msk.f32.mxu1 %vm478_vm0, %v477_v0  ;;  %v71_v6 = vld [vmem:[#allocation5 + $0x50] sm:$0xff]  ;;  %v70_v7 = vld [vmem:[#allocation5 + $0x48] sm:$0xff]  ;;  %v69_v8 = vld [vmem:[#allocation5 + $0x40] sm:$0xff]  ;;  %s260_s11 = sshll.u32 %s479_s10, 4  ;;  %s261_s11 = int_to_ptr.vmem [resolvable:$true] %s260_s11 }
  0x28   :  { %307 = vmatpush3.msra.mxu0 %v76_v1  ;;  %v68_v9 = vld [vmem:[#allocation5 + $0x38] sm:$0xff]  ;;  %v67_v10 = vld [vmem:[#allocation5 + $0x30] sm:$0xff]  ;;  %v66_v11 = vld [vmem:[#allocation5 + $0x28] sm:$0xff]  ;;  %s446_s12 = scalar_lea.vmem %s261_s11, 128  ;;  %p451_p2 = scmp.lt.s32.totalorder %s261_s11, %s261_s11 }
  0x29   :  { %308 = vmatprep.subr.mxu0 %v477_v0  ;;  %v65_v12 = vld [vmem:[#allocation5 + $0x20] sm:$0xff]  ;;  %v64_v13 = vld [vmem:[#allocation5 + $0x18] sm:$0xff]  ;;  %v63_v14 = vld [vmem:[#allocation5 + $0x10] sm:$0xff]  ;;  %p447_p1 = scmp.ne.s32.totalorder %s261_s11, %s446_s12  ;;  %p452_p3 = scmp.lt.s32.totalorder %s446_s12, %s446_s12 }
  0x2a   :  { %309 = vmatpush3.msra.mxu0 %v75_v2  ;;  %v62_v15 = vld [vmem:[#allocation5 + $0x8] sm:$0xff]  ;;  %v61_v16 = vld [vmem:[#allocation5] sm:$0xff]  ;;  %v60_v17 = vld [vmem:[#allocation2] sm:$0xff] }
  0x2b   :  { %310 = vmatprep.subr.mxu0 %v477_v0  ;;  %v175_v18 = vld [vmem:[#allocation7 + $0x78] sm:$0xff]  ;;  %v174_v19 = vld [vmem:[#allocation7 + $0x70] sm:$0xff]  ;;  %v173_v20 = vld [vmem:[#allocation7 + $0x68] sm:$0xff]  ;;  %p453_p4 = por %p452_p3, %p451_p2 }
  0x2c   :  { %311 = vmatpush3.msra.mxu0 %v74_v3  ;;  %342 = vmatpush3.msra.mxu1 %v175_v18  ;;  %v172_v21 = vld [vmem:[#allocation7 + $0x60] sm:$0xff]  ;;  %v171_v22 = vld [vmem:[#allocation7 + $0x58] sm:$0xff]  ;;  %v170_v23 = vld [vmem:[#allocation7 + $0x50] sm:$0xff] }
  0x2d   :  { %312 = vmatprep.subr.mxu0 %v477_v0  ;;  %343 = vmatprep.subr.mxu1 %v477_v0  ;;  %v270_v24 = vld [vmem:[%s564_s2] ss:$0 sm:$0xff]  ;;  %v169_v29 = vld [vmem:[#allocation7 + $0x48] sm:$0xff]  ;;  %v168_v30 = vld [vmem:[#allocation7 + $0x40] sm:$0xff]  ;;  %p454_p5 = pnand %p453_p4, %p447_p1 }
  0x2e   :  { %313 = vmatpush3.msra.mxu0 %v73_v4  ;;  %344 = vmatpush3.msra.mxu1 %v174_v19  ;;  %v167_v31 = vld [vmem:[#allocation7 + $0x38] sm:$0xff]  ;;  %v166_v32 = vld [vmem:[#allocation7 + $0x30] sm:$0xff]  ;;  %v165_v33 = vld [vmem:[#allocation7 + $0x28] sm:$0xff] }
  0x2f   :  { %314 = vmatprep.subr.mxu0 %v477_v0  ;;  %345 = vmatprep.subr.mxu1 %v477_v0  ;;  %v164_v34 = vld [vmem:[#allocation7 + $0x20] sm:$0xff]  ;;  %v163_v35 = vld [vmem:[#allocation7 + $0x18] sm:$0xff]  ;;  %v162_v36 = vld [vmem:[#allocation7 + $0x10] sm:$0xff] }
  0x30   :  { %315 = vmatpush3.msra.mxu0 %v72_v5  ;;  %346 = vmatpush3.msra.mxu1 %v173_v20  ;;  %v161_v37 = vld [vmem:[#allocation7 + $0x8] sm:$0xff]  ;;  %v160_v38 = vld [vmem:[#allocation7] sm:$0xff]  ;;  %v271_v43 = vld [vmem:[%s566_s4] ss:$0 sm:$0xff] }
  0x31   :  { %316 = vmatprep.subr.mxu0 %v477_v0  ;;  %347 = vmatprep.subr.mxu1 %v477_v0 }
  0x32   :  { %317 = vmatpush3.msra.mxu0 %v71_v6  ;;  %348 = vmatpush3.msra.mxu1 %v172_v21 }
  0x33   :  { %318 = vmatprep.subr.mxu0 %v477_v0  ;;  %349 = vmatprep.subr.mxu1 %v477_v0 }
  0x34   :  { %319 = vmatpush3.msra.mxu0 %v70_v7  ;;  %350 = vmatpush3.msra.mxu1 %v171_v22 }
  0x35   :  { %320 = vmatprep.subr.mxu0 %v477_v0  ;;  %351 = vmatprep.subr.mxu1 %v477_v0 }
  0x36   :  { %321 = vmatpush3.msra.mxu0 %v69_v8  ;;  %352 = vmatpush3.msra.mxu1 %v170_v23 }
  0x37   :  { %322 = vmatprep.subr.mxu0 %v477_v0  ;;  %353 = vmatprep.subr.mxu1 %v477_v0 }
  0x38   :  { %323 = vmatpush3.msra.mxu0 %v68_v9  ;;  %354 = vmatpush3.msra.mxu1 %v169_v29 }
  0x39   :  { %324 = vmatprep.subr.mxu0 %v477_v0  ;;  %355 = vmatprep.subr.mxu1 %v477_v0 }
  0x3a   :  { %325 = vmatpush3.msra.mxu0 %v67_v10  ;;  %356 = vmatpush3.msra.mxu1 %v168_v30 }
  0x3b   :  { %326 = vmatprep.subr.mxu0 %v477_v0  ;;  %357 = vmatprep.subr.mxu1 %v477_v0 }
  0x3c   :  { %327 = vmatpush3.msra.mxu0 %v66_v11  ;;  %358 = vmatpush3.msra.mxu1 %v167_v31 }
  0x3d   :  { %328 = vmatprep.subr.mxu0 %v477_v0  ;;  %359 = vmatprep.subr.mxu1 %v477_v0 }
  0x3e   :  { %329 = vmatpush3.msra.mxu0 %v65_v12  ;;  %360 = vmatpush3.msra.mxu1 %v166_v32 }
  0x3f   :  { %330 = vmatprep.subr.mxu0 %v477_v0  ;;  %361 = vmatprep.subr.mxu1 %v477_v0 }
  0x40   :  { %331 = vmatpush3.msra.mxu0 %v64_v13  ;;  %362 = vmatpush3.msra.mxu1 %v165_v33 }
  0x41   :  { %332 = vmatprep.subr.mxu0 %v477_v0  ;;  %363 = vmatprep.subr.mxu1 %v477_v0 }
  0x42   :  { %333 = vmatpush3.msra.mxu0 %v63_v14  ;;  %364 = vmatpush3.msra.mxu1 %v164_v34 }
  0x43   :  { %334 = vmatprep.subr.mxu0 %v477_v0  ;;  %365 = vmatprep.subr.mxu1 %v477_v0 }
  0x44   :  { %335 = vmatpush3.msra.mxu0 %v62_v15  ;;  %366 = vmatpush3.msra.mxu1 %v163_v35 }
  0x45   :  { %336 = vmatprep.subr.mxu0 %v477_v0  ;;  %367 = vmatprep.subr.mxu1 %v477_v0 }
  0x46   :  { %337 = vmatpush3.msra.mxu0 %v61_v16  ;;  %368 = vmatpush3.msra.mxu1 %v162_v36 }
  0x47   :  { %339 = vmatmul.mubr.f32.vlgmr.msra.gmra.mxu0 %v60_v17  ;;  %369 = vmatprep.subr.mxu1 %v477_v0 }
  0x48   :  { %370 = vmatpush3.msra.mxu1 %v161_v37 }
  0x49   :  { %371 = vmatprep.subr.mxu1 %v477_v0 }
  0x4a   :  { %372 = vmatpush3.msra.mxu1 %v160_v38 }
 0x107   :  { %v150_v25 = vpop.f32.mrf.mxu0 }
 0x108   :  { %v151_v26 = vadd.f32 %v270_v24, %v150_v25 }
 0x109   :  { %v340_v27 = vpop.f32.mrf.mxu0 }
 0x10a   :  { %v154_v28 = vmul.f32 %v151_v26, %v151_v26 }
 0x10c   :  { %155 = vadd.xlane.f32.xlu0 %v154_v28 }
 0x195   :  { %v156_v39 = vpop.xlane.xlu0 %155 }
 0x196   :  { %384 = vrsqrt.f32 %v156_v39 }
 0x1a3   :  { %v385_v40 = vpop.eup %384 }
 0x1a4   :  { %v158_v41 = vmul.f32 %v385_v40, %v151_v26 }
 0x1a6   :  { %v159_v42 = vmax.f32 %v158_v41, 0.0 }
 0x1a8   :  { %374 = vmatmul.mubr.f32.vlgmr.msra.gmra.mxu1 %v159_v42 }
 0x268   :  { %v249_v44 = vpop.f32.mrf.mxu1 }
 0x269   :  { %v250_v45 = vadd.f32 %v271_v43, %v249_v44 }
 0x26a   :  { %v375_v46 = vpop.f32.mrf.mxu1 }
 0x26b   :  { %253 = vst [vmem:[#allocation8] sm:$0xff] %v250_v45 }
 0x26c   :  { %457 = shalt.err (!%p454_p5)
}
 0x26d   :  { %263 = dma.vmem_to_hbm [thread:$0]  %s261_s11, 128, %s567_s5, [#allocation4]  }
 0x26e   :  { %470 = dma.done.wait [#allocation4], 128  }
 0x26f   :  { %471 = vsyncadd [#allocation4], 4294967168 }
 0x270   :  { %267 = vsyncpa [#allocation3], 1 }
 0x271   :  { %268 = vsyncpa [#allocation6], 1 }
 0x272   :  { %269 = vsyncpa [#allocation4], 1 }

</bundles_post_ra>
